<compile_context>
chip_gen: v5e
topology: v5e:2x2
jax: 0.10.0
libtpu: 0.0.40
codegen_flags: <defaults>
</compile_context>

<pallas_src>
import math
import jax
import jax.numpy as jnp
from jax.experimental import pallas as pl
from jax.experimental.pallas import tpu as pltpu

D_MODEL = 32
N_HEADS = 4
D_K = D_MODEL // N_HEADS
D_FF = 64
SEQ = 8
BATCH = 2
EPS = 1e-6  # annotated-transformer LayerNorm eps

# ---- packed parameter slab layout (P_ROWS x 128 lanes, f32) -----------------------------------
_R_WQKV = 0                          # rows [  0: 32), cols [0:96)  fused [wq | wk | wv]
_R_W1 = _R_WQKV + D_MODEL            # rows [ 32: 64), cols [0:64)  FFN w1
_R_W2 = _R_W1 + D_MODEL              # rows [ 64:128), cols [0:32)  FFN w2
_R_WO = _R_W2 + D_FF                 # rows [128:160), cols [0:32)  attention output projection
_R_VEC = _R_WO + D_MODEL             # rows [160:168): bqkv, bo, ln1g, ln1b, b1, b2, ln2g, ln2b
_R_SEL = _R_VEC + 8                  # rows [168:200), cols [0:32)  block-diag head selector
P_ROWS = _R_SEL + N_HEADS * SEQ      # 200 (multiple of 8)


def _layer_norm(x, gamma, beta):
    # gamma * (x - mean) / (std + eps) + beta, torch.std semantics (unbiased, ddof=1), eps OUTSIDE sqrt.
    d = x.shape[-1]
    mean = jnp.sum(x, axis=-1, keepdims=True) * (1.0 / d)
    xc = x - mean
    var = jnp.sum(xc * xc, axis=-1, keepdims=True) * (1.0 / (d - 1))
    # approx reciprocal runs on the EUP slot; ~1e-4 relative error, inside test tolerance.
    inv = pl.reciprocal(jnp.sqrt(var) + EPS, approx=True)
    return gamma * xc * inv + beta


def encoder_layer_kernel(x_ref, mask_ref, p_ref, out_ref):
    x = x_ref[...]                                   # (S, D) f32, one batch element per grid step
    keep = mask_ref[...] > 0.0                       # (1, S) bool, True = attendable key position

    # ---- static views into the single packed parameter slab (resident in VMEM) ----
    wqkv = p_ref[_R_WQKV:_R_WQKV + D_MODEL, 0:3 * D_MODEL]        # (D, 3D)
    w1 = p_ref[_R_W1:_R_W1 + D_MODEL, 0:D_FF]                     # (D, D_FF)
    w2 = p_ref[_R_W2:_R_W2 + D_FF, 0:D_MODEL]                     # (D_FF, D)
    wo = p_ref[_R_WO:_R_WO + D_MODEL, 0:D_MODEL]                  # (D, D)
    vec = p_ref[_R_VEC:_R_VEC + 8, :]                             # (8, 128) biases / LN params
    sel = p_ref[_R_SEL:_R_SEL + N_HEADS * SEQ, 0:D_MODEL]         # (H*S, D) 0/1 head selector

    bqkv = vec[0:1, 0:3 * D_MODEL]
    bo = vec[1:2, 0:D_MODEL]
    ln1g = vec[2:3, 0:D_MODEL]
    ln1b = vec[3:4, 0:D_MODEL]
    b1 = vec[4:5, 0:D_FF]
    b2 = vec[5:6, 0:D_MODEL]
    ln2g = vec[6:7, 0:D_MODEL]
    ln2b = vec[7:8, 0:D_MODEL]

    # additive key-mask bias (1, S); fully-masked rows -> uniform attention, same as reference.
    bias = jnp.where(keep, 0.0, -1e9)

    # ---- sublayer 0: multi-head self-attention on LayerNorm(x), residual add ----
    xn = _layer_norm(x, ln1g, ln1b)

    # fused QKV: ONE lane-dense (S,32)@(32,96) matmul
    qkv = jnp.dot(xn, wqkv, preferred_element_type=jnp.float32) + bqkv    # (S, 3D)
    q = qkv[:, 0:D_MODEL]                        # (S, D), head-major columns (lane offset 0)
    k = qkv[:, D_MODEL:2 * D_MODEL]
    v = qkv[:, 2 * D_MODEL:3 * D_MODEL]

    # heads stacked on sublanes: row r = h*S + i.  sel[r, c] = 1 iff c // D_K == r // S, so
    # q_blk keeps exactly head h's D_K query channels in its S-row block.
    q_blk = jnp.concatenate([q] * N_HEADS, axis=0) * sel                  # (H*S, D)

    scale = 1.0 / math.sqrt(D_K)
    s = jnp.einsum('rc,jc->rj', q_blk, k,
                   preferred_element_type=jnp.float32) * scale + bias     # (H*S, S), ONE matmul
    p = jax.nn.softmax(s, axis=-1)               # per (head, query) row over the S keys

    # ONE value matmul for all heads; sel zeroes the cross-head blocks, then the H row groups
    # collapse onto the channel axis -> (S, D) head-concat layout (== reference layout).
    o_all = jnp.dot(p, v, preferred_element_type=jnp.float32) * sel       # (H*S, D)
    o_cat = o_all[0:SEQ]
    for h in range(1, N_HEADS):                  # static unroll: 3 free sublane-block selects + adds
        o_cat = o_cat + o_all[h * SEQ:(h + 1) * SEQ]

    attn = jnp.dot(o_cat, wo, preferred_element_type=jnp.float32) + bo    # ONE K=32 matmul
    x1 = x + attn                                # dropout is identity in eval mode

    # ---- sublayer 1: position-wise feed-forward on LayerNorm(x1), residual add ----
    xn2 = _layer_norm(x1, ln2g, ln2b)
    h1 = jnp.maximum(jnp.dot(xn2, w1, preferred_element_type=jnp.float32) + b1, 0.0)
    h2 = jnp.dot(h1, w2, preferred_element_type=jnp.float32) + b2
    # TODO(synk): a lane-dense (S*D/128, 128) output slab would avoid the 32-wide masked store,
    # but needs an in-kernel lane-merge relayout that costs more than it saves at 1 KB/step.
    out_ref[...] = (x1 + h2).astype(out_ref.dtype)


def pack_params(p):
    """One-time layout plumbing: fuse QKV and pack everything into a single (P_ROWS,128) slab."""
    slab = jnp.zeros((P_ROWS, 128), jnp.float32)
    wqkv = jnp.concatenate([p["wq"], p["wk"], p["wv"]], axis=1)           # (D, 3D)
    bqkv = jnp.concatenate([p["bq"], p["bk"], p["bv"]], axis=1)           # (1, 3D)
    slab = slab.at[_R_WQKV:_R_WQKV + D_MODEL, 0:3 * D_MODEL].set(wqkv)
    slab = slab.at[_R_W1:_R_W1 + D_MODEL, 0:D_FF].set(p["w1"])
    slab = slab.at[_R_W2:_R_W2 + D_FF, 0:D_MODEL].set(p["w2"])
    slab = slab.at[_R_WO:_R_WO + D_MODEL, 0:D_MODEL].set(p["wo"])
    slab = slab.at[_R_VEC + 0, 0:3 * D_MODEL].set(bqkv[0])
    slab = slab.at[_R_VEC + 1, 0:D_MODEL].set(p["bo"][0])
    slab = slab.at[_R_VEC + 2, 0:D_MODEL].set(p["ln1g"][0])
    slab = slab.at[_R_VEC + 3, 0:D_MODEL].set(p["ln1b"][0])
    slab = slab.at[_R_VEC + 4, 0:D_FF].set(p["b1"][0])
    slab = slab.at[_R_VEC + 5, 0:D_MODEL].set(p["b2"][0])
    slab = slab.at[_R_VEC + 6, 0:D_MODEL].set(p["ln2g"][0])
    slab = slab.at[_R_VEC + 7, 0:D_MODEL].set(p["ln2b"][0])
    # block-diagonal head selector: sel[h*SEQ + i, c] = 1 iff c // D_K == h  (compile-time const)
    r = jnp.arange(N_HEADS * SEQ)[:, None] // SEQ
    c = jnp.arange(D_MODEL)[None, :] // D_K
    slab = slab.at[_R_SEL:_R_SEL + N_HEADS * SEQ, 0:D_MODEL].set((r == c).astype(jnp.float32))
    return slab


def encoder_layer(x, mask, param_slab):
    """x: (B, SEQ, D) f32, mask: (B, 1, SEQ) f32 (1=keep, 0=mask), param_slab: pack_params(...)."""
    B, S, D = x.shape
    # loud failure (rather than silent mixing) if called at a shape the packed slab doesn't match
    assert S == SEQ and D == D_MODEL and param_slab.shape == (P_ROWS, 128)
    return pl.pallas_call(
        encoder_layer_kernel,
        out_shape=jax.ShapeDtypeStruct((B, S, D), x.dtype),
        grid_spec=pltpu.PrefetchScalarGridSpec(
            num_scalar_prefetch=0,
            grid=(B,),
            in_specs=[
                pl.BlockSpec((None, S, D), lambda b: (b, 0, 0)),      # x: one batch row per step
                pl.BlockSpec((None, 1, S), lambda b: (b, 0, 0)),      # mask: (1, S) per step
                pl.BlockSpec((P_ROWS, 128), lambda b: (0, 0)),        # slab: same block -> resident
            ],
            out_specs=pl.BlockSpec((None, S, D), lambda b: (b, 0, 0)),
        ),
        compiler_params=pltpu.CompilerParams(
            # shards the batch axis across TensorCores on multi-core chips (v7x); serial on 1-TC
            dimension_semantics=("parallel",)),
    )(x, mask, param_slab)


def init_params(key):
    ks = jax.random.split(key, 8)
    scale = 0.1
    return {
        "wq": jax.random.normal(ks[0], (D_MODEL, D_MODEL), jnp.float32) * scale,
        "bq": jnp.zeros((1, D_MODEL), jnp.float32),
        "wk": jax.random.normal(ks[1], (D_MODEL, D_MODEL), jnp.float32) * scale,
        "bk": jnp.zeros((1, D_MODEL), jnp.float32),
        "wv": jax.random.normal(ks[2], (D_MODEL, D_MODEL), jnp.float32) * scale,
        "bv": jnp.zeros((1, D_MODEL), jnp.float32),
        "wo": jax.random.normal(ks[3], (D_MODEL, D_MODEL), jnp.float32) * scale,
        "bo": jnp.zeros((1, D_MODEL), jnp.float32),
        "ln1g": jnp.ones((1, D_MODEL), jnp.float32),
        "ln1b": jnp.zeros((1, D_MODEL), jnp.float32),
        "w1": jax.random.normal(ks[4], (D_MODEL, D_FF), jnp.float32) * scale,
        "b1": jnp.zeros((1, D_FF), jnp.float32),
        "w2": jax.random.normal(ks[5], (D_FF, D_MODEL), jnp.float32) * scale,
        "b2": jnp.zeros((1, D_MODEL), jnp.float32),
        "ln2g": jnp.ones((1, D_MODEL), jnp.float32),
        "ln2b": jnp.zeros((1, D_MODEL), jnp.float32),
    }


def reference(x, mask, p):
    # Pure-JAX reference matching the PyTorch forward (eval mode, dropout = identity).
    def ln(y, g, b):
        mean = y.mean(-1, keepdims=True)
        var = ((y - mean) ** 2).sum(-1, keepdims=True) / (y.shape[-1] - 1)
        return g * (y - mean) / (jnp.sqrt(var) + EPS) + b

    B, S, D = x.shape
    xn = ln(x, p["ln1g"], p["ln1b"])
    q = xn @ p["wq"] + p["bq"]
    k = xn @ p["wk"] + p["bk"]
    v = xn @ p["wv"] + p["bv"]
    qh = q.reshape(B, S, N_HEADS, D_K).transpose(0, 2, 1, 3)
    kh = k.reshape(B, S, N_HEADS, D_K).transpose(0, 2, 1, 3)
    vh = v.reshape(B, S, N_HEADS, D_K).transpose(0, 2, 1, 3)
    s = qh @ kh.transpose(0, 1, 3, 2) / math.sqrt(D_K)          # (B,H,S,S)
    s = jnp.where(mask[:, None, :, :] == 0.0, -1e9, s)          # mask (B,1,S) -> (B,1,1,S)
    pa = jax.nn.softmax(s, axis=-1)
    attn = (pa @ vh).transpose(0, 2, 1, 3).reshape(B, S, D)
    x1 = x + (attn @ p["wo"] + p["bo"])
    xn2 = ln(x1, p["ln2g"], p["ln2b"])
    ff = jnp.maximum(xn2 @ p["w1"] + p["b1"], 0.0) @ p["w2"] + p["b2"]
    return x1 + ff


if __name__ == "__main__":
    key = jax.random.PRNGKey(0)
    kx, kp = jax.random.split(key)
    x = jax.random.normal(kx, (BATCH, SEQ, D_MODEL), jnp.float32)
    # mask: keep first 6 positions of batch 0, all positions of batch 1
    mask = jnp.ones((BATCH, 1, SEQ), jnp.float32)
    mask = mask.at[0, 0, 6:].set(0.0)
    params = init_params(kp)
    param_slab = jax.block_until_ready(pack_params(params))     # one-time packing, outside the fwd

    fwd = jax.jit(encoder_layer)
    out = jax.block_until_ready(fwd(x, mask, param_slab))

    ref = reference(x, mask, params)
    assert out.shape == ref.shape
    # slightly relaxed tolerance: pl.reciprocal(approx=True) in LayerNorm adds ~1e-4 rel error
    assert jnp.allclose(out, ref, rtol=2e-3, atol=2e-3), "mismatch vs JAX reference"

    print("KERNEL_OK")
</pallas_src>

<mosaic_0001>
module attributes {stable_mosaic.version = 11 : i64} {
  func.func @encoder_layer_kernel(%arg0: i32, %arg1: memref<1x8x32xf32, #tpu.memory_space<vmem>>, %arg2: memref<1x1x8xf32, #tpu.memory_space<vmem>>, %arg3: memref<200x128xf32, #tpu.memory_space<vmem>>, %arg4: memref<1x8x32xf32, #tpu.memory_space<vmem>>) attributes {dimension_semantics = [#tpu.dimension_semantics<parallel>], iteration_bounds = array<i64: 2>, scalar_prefetch = 0 : i64, scratch_operands = 0 : i64, tpu.core_type = #tpu.core_type<tc>, window_params = [{transform_indices = @transform_0, window_bounds = array<i64: 1, 8, 32>}, {transform_indices = @transform_1, window_bounds = array<i64: 1, 1, 8>}, {pipeline_mode = #tpu.pipeline_mode<synchronous>, transform_indices = @transform_2, window_bounds = array<i64: 200, 128>}, {transform_indices = @transform_3, window_bounds = array<i64: 1, 8, 32>}]} {
    %c0 = arith.constant 0 : index
    %c0_0 = arith.constant 0 : index
    %c0_1 = arith.constant 0 : index
    %0 = vector.load %arg1[%c0, %c0_0, %c0_1] : memref<1x8x32xf32, #tpu.memory_space<vmem>>, vector<1x8x32xf32>
    %1 = vector.shape_cast %0 : vector<1x8x32xf32> to vector<8x32xf32>
    %c0_2 = arith.constant 0 : index
    %c0_3 = arith.constant 0 : index
    %c0_4 = arith.constant 0 : index
    %2 = vector.load %arg2[%c0_2, %c0_3, %c0_4] : memref<1x1x8xf32, #tpu.memory_space<vmem>>, vector<1x1x8xf32>
    %3 = vector.shape_cast %2 : vector<1x1x8xf32> to vector<1x8xf32>
    %cst = arith.constant 0.000000e+00 : f32
    %4 = vector.broadcast %cst : f32 to vector<1x8xf32>
    %5 = arith.cmpf ogt, %3, %4 : vector<1x8xf32>
    %c0_5 = arith.constant 0 : index
    %c0_6 = arith.constant 0 : index
    %6 = vector.load %arg3[%c0_5, %c0_6] : memref<200x128xf32, #tpu.memory_space<vmem>>, vector<32x96xf32>
    %c32 = arith.constant 32 : index
    %c0_7 = arith.constant 0 : index
    %7 = vector.load %arg3[%c32, %c0_7] : memref<200x128xf32, #tpu.memory_space<vmem>>, vector<32x64xf32>
    %c64 = arith.constant 64 : index
    %c0_8 = arith.constant 0 : index
    %8 = vector.load %arg3[%c64, %c0_8] : memref<200x128xf32, #tpu.memory_space<vmem>>, vector<64x32xf32>
    %c128 = arith.constant 128 : index
    %c0_9 = arith.constant 0 : index
    %9 = vector.load %arg3[%c128, %c0_9] : memref<200x128xf32, #tpu.memory_space<vmem>>, vector<32x32xf32>
    %c160 = arith.constant 160 : index
    %c0_10 = arith.constant 0 : index
    %10 = vector.load %arg3[%c160, %c0_10] : memref<200x128xf32, #tpu.memory_space<vmem>>, vector<8x128xf32>
    %c168 = arith.constant 168 : index
    %c0_11 = arith.constant 0 : index
    %11 = vector.load %arg3[%c168, %c0_11] : memref<200x128xf32, #tpu.memory_space<vmem>>, vector<32x32xf32>
    %12 = vector.extract_strided_slice %10 {offsets = [0, 0], sizes = [1, 96], strides = [1, 1]} : vector<8x128xf32> to vector<1x96xf32>
    %13 = vector.extract_strided_slice %10 {offsets = [1, 0], sizes = [1, 32], strides = [1, 1]} : vector<8x128xf32> to vector<1x32xf32>
    %14 = vector.extract_strided_slice %10 {offsets = [2, 0], sizes = [1, 32], strides = [1, 1]} : vector<8x128xf32> to vector<1x32xf32>
    %15 = vector.extract_strided_slice %10 {offsets = [3, 0], sizes = [1, 32], strides = [1, 1]} : vector<8x128xf32> to vector<1x32xf32>
    %16 = vector.extract_strided_slice %10 {offsets = [4, 0], sizes = [1, 64], strides = [1, 1]} : vector<8x128xf32> to vector<1x64xf32>
    %17 = vector.extract_strided_slice %10 {offsets = [5, 0], sizes = [1, 32], strides = [1, 1]} : vector<8x128xf32> to vector<1x32xf32>
    %18 = vector.extract_strided_slice %10 {offsets = [6, 0], sizes = [1, 32], strides = [1, 1]} : vector<8x128xf32> to vector<1x32xf32>
    %19 = vector.extract_strided_slice %10 {offsets = [7, 0], sizes = [1, 32], strides = [1, 1]} : vector<8x128xf32> to vector<1x32xf32>
    %cst_12 = arith.constant 0.000000e+00 : f32
    %cst_13 = arith.constant -1.000000e+09 : f32
    %20 = vector.broadcast %cst_12 : f32 to vector<1x8xf32>
    %21 = vector.broadcast %cst_13 : f32 to vector<1x8xf32>
    %22 = arith.select %5, %20, %21 : vector<1x8xi1>, vector<1x8xf32>
    %cst_14 = arith.constant dense<0.000000e+00> : vector<8xf32>
    %23 = vector.multi_reduction <add>, %1, %cst_14 [1] : vector<8x32xf32> to vector<8xf32>
    %24 = vector.shape_cast %23 : vector<8xf32> to vector<8x1xf32>
    %cst_15 = arith.constant 3.125000e-02 : f32
    %25 = vector.broadcast %cst_15 : f32 to vector<8x1xf32>
    %26 = arith.mulf %24, %25 : vector<8x1xf32>
    %27 = vector.broadcast %26 : vector<8x1xf32> to vector<8x32xf32>
    %28 = arith.subf %1, %27 : vector<8x32xf32>
    %29 = arith.mulf %28, %28 : vector<8x32xf32>
    %cst_16 = arith.constant dense<0.000000e+00> : vector<8xf32>
    %30 = vector.multi_reduction <add>, %29, %cst_16 [1] : vector<8x32xf32> to vector<8xf32>
    %31 = vector.shape_cast %30 : vector<8xf32> to vector<8x1xf32>
    %cst_17 = arith.constant 0.0322580636 : f32
    %32 = vector.broadcast %cst_17 : f32 to vector<8x1xf32>
    %33 = arith.mulf %31, %32 : vector<8x1xf32>
    %34 = math.sqrt %33 : vector<8x1xf32>
    %cst_18 = arith.constant 9.99999997E-7 : f32
    %35 = vector.broadcast %cst_18 : f32 to vector<8x1xf32>
    %36 = arith.addf %34, %35 : vector<8x1xf32>
    %37 = tpu.reciprocal %36 {approx = true} : vector<8x1xf32> -> vector<8x1xf32>
    %38 = vector.broadcast %14 : vector<1x32xf32> to vector<8x32xf32>
    %39 = arith.mulf %38, %28 : vector<8x32xf32>
    %40 = vector.broadcast %37 : vector<8x1xf32> to vector<8x32xf32>
    %41 = arith.mulf %39, %40 : vector<8x32xf32>
    %42 = vector.broadcast %15 : vector<1x32xf32> to vector<8x32xf32>
    %43 = arith.addf %41, %42 : vector<8x32xf32>
    %cst_19 = arith.constant dense<0.000000e+00> : vector<8x96xf32>
    %44 = tpu.matmul %43, %6, %cst_19 {dimension_numbers = #tpu.dot_dimension_numbers<[1], [0], [0], [1], [0, 0, 1, 1], [], []>} : vector<8x32xf32>, vector<32x96xf32>, vector<8x96xf32> -> vector<8x96xf32>
    %45 = vector.broadcast %12 : vector<1x96xf32> to vector<8x96xf32>
    %46 = arith.addf %44, %45 : vector<8x96xf32>
    %47 = vector.extract_strided_slice %46 {offsets = [0, 0], sizes = [8, 32], strides = [1, 1]} : vector<8x96xf32> to vector<8x32xf32>
    %48 = vector.extract_strided_slice %46 {offsets = [0, 32], sizes = [8, 32], strides = [1, 1]} : vector<8x96xf32> to vector<8x32xf32>
    %49 = vector.extract_strided_slice %46 {offsets = [0, 64], sizes = [8, 32], strides = [1, 1]} : vector<8x96xf32> to vector<8x32xf32>
    %50 = tpu.concatenate %47, %47, %47, %47 in 0 : vector<8x32xf32>, vector<8x32xf32>, vector<8x32xf32>, vector<8x32xf32> -> vector<32x32xf32>
    %51 = arith.mulf %50, %11 : vector<32x32xf32>
    "tpu.trace_start"() <{level = 10 : i32, message = "rc,jc->rj"}> : () -> ()
    %cst_20 = arith.constant dense<0.000000e+00> : vector<32x8xf32>
    %52 = tpu.matmul %51, %48, %cst_20 {dimension_numbers = #tpu.dot_dimension_numbers<[1], [1], [0], [0], [0, 0, 1, 0], [], []>} : vector<32x32xf32>, vector<8x32xf32>, vector<32x8xf32> -> vector<32x8xf32>
    "tpu.trace_stop"() : () -> ()
    %cst_21 = arith.constant 0.353553385 : f32
    %53 = vector.broadcast %cst_21 : f32 to vector<32x8xf32>
    %54 = arith.mulf %52, %53 : vector<32x8xf32>
    %55 = vector.broadcast %22 : vector<1x8xf32> to vector<32x8xf32>
    %56 = arith.addf %54, %55 : vector<32x8xf32>
    %cst_22 = arith.constant dense<0xFF800000> : vector<32xf32>
    %57 = vector.multi_reduction <maximumf>, %56, %cst_22 [1] : vector<32x8xf32> to vector<32xf32>
    %cst_23 = arith.constant 0xFF800000 : f32
    %58 = vector.broadcast %cst_23 : f32 to vector<32xf32>
    %59 = arith.maximumf %58, %57 : vector<32xf32>
    %60 = vector.shape_cast %59 : vector<32xf32> to vector<32x1xf32>
    %61 = vector.broadcast %60 : vector<32x1xf32> to vector<32x8xf32>
    %62 = arith.subf %56, %61 : vector<32x8xf32>
    %63 = math.exp %62 : vector<32x8xf32>
    %cst_24 = arith.constant dense<0.000000e+00> : vector<32xf32>
    %64 = vector.multi_reduction <add>, %63, %cst_24 [1] : vector<32x8xf32> to vector<32xf32>
    %65 = vector.shape_cast %64 : vector<32xf32> to vector<32x1xf32>
    %66 = vector.broadcast %65 : vector<32x1xf32> to vector<32x8xf32>
    %67 = arith.divf %63, %66 : vector<32x8xf32>
    %cst_25 = arith.constant dense<0.000000e+00> : vector<32x32xf32>
    %68 = tpu.matmul %67, %49, %cst_25 {dimension_numbers = #tpu.dot_dimension_numbers<[1], [0], [0], [1], [0, 0, 1, 1], [], []>} : vector<32x8xf32>, vector<8x32xf32>, vector<32x32xf32> -> vector<32x32xf32>
    %69 = arith.mulf %68, %11 : vector<32x32xf32>
    %70 = vector.extract_strided_slice %69 {offsets = [0, 0], sizes = [8, 32], strides = [1, 1]} : vector<32x32xf32> to vector<8x32xf32>
    %71 = vector.extract_strided_slice %69 {offsets = [8, 0], sizes = [8, 32], strides = [1, 1]} : vector<32x32xf32> to vector<8x32xf32>
    %72 = arith.addf %70, %71 : vector<8x32xf32>
    %73 = vector.extract_strided_slice %69 {offsets = [16, 0], sizes = [8, 32], strides = [1, 1]} : vector<32x32xf32> to vector<8x32xf32>
    %74 = arith.addf %72, %73 : vector<8x32xf32>
    %75 = vector.extract_strided_slice %69 {offsets = [24, 0], sizes = [8, 32], strides = [1, 1]} : vector<32x32xf32> to vector<8x32xf32>
    %76 = arith.addf %74, %75 : vector<8x32xf32>
    %cst_26 = arith.constant dense<0.000000e+00> : vector<8x32xf32>
    %77 = tpu.matmul %76, %9, %cst_26 {dimension_numbers = #tpu.dot_dimension_numbers<[1], [0], [0], [1], [0, 0, 1, 1], [], []>} : vector<8x32xf32>, vector<32x32xf32>, vector<8x32xf32> -> vector<8x32xf32>
    %78 = vector.broadcast %13 : vector<1x32xf32> to vector<8x32xf32>
    %79 = arith.addf %77, %78 : vector<8x32xf32>
    %80 = arith.addf %1, %79 : vector<8x32xf32>
    %cst_27 = arith.constant dense<0.000000e+00> : vector<8xf32>
    %81 = vector.multi_reduction <add>, %80, %cst_27 [1] : vector<8x32xf32> to vector<8xf32>
    %82 = vector.shape_cast %81 : vector<8xf32> to vector<8x1xf32>
    %cst_28 = arith.constant 3.125000e-02 : f32
    %83 = vector.broadcast %cst_28 : f32 to vector<8x1xf32>
    %84 = arith.mulf %82, %83 : vector<8x1xf32>
    %85 = vector.broadcast %84 : vector<8x1xf32> to vector<8x32xf32>
    %86 = arith.subf %80, %85 : vector<8x32xf32>
    %87 = arith.mulf %86, %86 : vector<8x32xf32>
    %cst_29 = arith.constant dense<0.000000e+00> : vector<8xf32>
    %88 = vector.multi_reduction <add>, %87, %cst_29 [1] : vector<8x32xf32> to vector<8xf32>
    %89 = vector.shape_cast %88 : vector<8xf32> to vector<8x1xf32>
    %cst_30 = arith.constant 0.0322580636 : f32
    %90 = vector.broadcast %cst_30 : f32 to vector<8x1xf32>
    %91 = arith.mulf %89, %90 : vector<8x1xf32>
    %92 = math.sqrt %91 : vector<8x1xf32>
    %cst_31 = arith.constant 9.99999997E-7 : f32
    %93 = vector.broadcast %cst_31 : f32 to vector<8x1xf32>
    %94 = arith.addf %92, %93 : vector<8x1xf32>
    %95 = tpu.reciprocal %94 {approx = true} : vector<8x1xf32> -> vector<8x1xf32>
    %96 = vector.broadcast %18 : vector<1x32xf32> to vector<8x32xf32>
    %97 = arith.mulf %96, %86 : vector<8x32xf32>
    %98 = vector.broadcast %95 : vector<8x1xf32> to vector<8x32xf32>
    %99 = arith.mulf %97, %98 : vector<8x32xf32>
    %100 = vector.broadcast %19 : vector<1x32xf32> to vector<8x32xf32>
    %101 = arith.addf %99, %100 : vector<8x32xf32>
    %cst_32 = arith.constant dense<0.000000e+00> : vector<8x64xf32>
    %102 = tpu.matmul %101, %7, %cst_32 {dimension_numbers = #tpu.dot_dimension_numbers<[1], [0], [0], [1], [0, 0, 1, 1], [], []>} : vector<8x32xf32>, vector<32x64xf32>, vector<8x64xf32> -> vector<8x64xf32>
    %103 = vector.broadcast %16 : vector<1x64xf32> to vector<8x64xf32>
    %104 = arith.addf %102, %103 : vector<8x64xf32>
    %cst_33 = arith.constant 0.000000e+00 : f32
    %105 = vector.broadcast %cst_33 : f32 to vector<8x64xf32>
    %106 = arith.maximumf %104, %105 : vector<8x64xf32>
    %cst_34 = arith.constant dense<0.000000e+00> : vector<8x32xf32>
    %107 = tpu.matmul %106, %8, %cst_34 {dimension_numbers = #tpu.dot_dimension_numbers<[1], [0], [0], [1], [0, 0, 1, 1], [], []>} : vector<8x64xf32>, vector<64x32xf32>, vector<8x32xf32> -> vector<8x32xf32>
    %108 = vector.broadcast %17 : vector<1x32xf32> to vector<8x32xf32>
    %109 = arith.addf %107, %108 : vector<8x32xf32>
    %110 = arith.addf %80, %109 : vector<8x32xf32>
    %c0_35 = arith.constant 0 : index
    %c0_36 = arith.constant 0 : index
    %c0_37 = arith.constant 0 : index
    %111 = vector.load %arg4[%c0_35, %c0_36, %c0_37] : memref<1x8x32xf32, #tpu.memory_space<vmem>>, vector<1x8x32xf32>
    %112 = vector.shape_cast %111 : vector<1x8x32xf32> to vector<8x32xf32>
    %113 = vector.shape_cast %110 : vector<8x32xf32> to vector<1x8x32xf32>
    tpu.vector_store %arg4[%c0_35, %c0_36, %c0_37], %113 {strides = array<i32>} : memref<1x8x32xf32, #tpu.memory_space<vmem>>, vector<1x8x32xf32>,
    return
  }
  func.func @transform_0(%arg0: i32) -> (i32, i32, i32) {
    %c0_i32 = arith.constant 0 : i32
    %c0_i32_0 = arith.constant 0 : i32
    %c0_i32_1 = arith.constant 0 : i32
    return %arg0, %c0_i32, %c0_i32_0 : i32, i32, i32
  }
  func.func @transform_1(%arg0: i32) -> (i32, i32, i32) {
    %c0_i32 = arith.constant 0 : i32
    %c0_i32_0 = arith.constant 0 : i32
    %c0_i32_1 = arith.constant 0 : i32
    return %arg0, %c0_i32, %c0_i32_0 : i32, i32, i32
  }
  func.func @transform_2(%arg0: i32) -> (i32, i32) {
    %c0_i32 = arith.constant 0 : i32
    %c0_i32_0 = arith.constant 0 : i32
    %c0_i32_1 = arith.constant 0 : i32
    return %c0_i32, %c0_i32_0 : i32, i32
  }
  func.func @transform_3(%arg0: i32) -> (i32, i32, i32) {
    %c0_i32 = arith.constant 0 : i32
    %c0_i32_0 = arith.constant 0 : i32
    %c0_i32_1 = arith.constant 0 : i32
    return %arg0, %c0_i32, %c0_i32_0 : i32, i32, i32
  }
}

</mosaic_0001>

<bundles_post_ra>
// kernel: encoder_layer.1
= control target key start
LH: loop header
LB: loop body
LE: loop exit
PB: predicated region body
PF: predicated region fallthrough
CT: control target
= control target key end

     0   :  { %s1320_s0 = inlined_call_operand.hbm [shape: f32[2,8,32], index: 0, kind: input, shape index: {}]   ;;  %s1321_s1 = inlined_call_operand.hbm [shape: f32[2,1,8], index: 1, kind: input, shape index: {}]   ;;  %s1322_s2 = inlined_call_operand.hbm [shape: f32[200,128], index: 2, kind: input, shape index: {}]   ;;  %s1323_s3 = inlined_call_operand.hbm [shape: f32[2,8,32], index: 3, kind: output, shape index: {}]  }
   0x1   :  { %1324 = sst [smem:[#allocation14_spill]] %s1322_s2 }
   0x2   :  { %8 = vsyncpa [#allocation3], 0 }
   0x3   :  { %10 = vsyncpa [#allocation3 + $0x1], 0 }
   0x4   :  { %11 = vsyncpa [#allocation6], 0 }
   0x5   :  { %13 = vsyncpa [#allocation6 + $0x1], 0 }
   0x6   :  { %14 = vsyncpa [#allocation4], 0 }
   0x7   :  { %16 = vsyncpa [#allocation4 + $0x1], 0  ;;  %s1061_s12 = smov 0   ;;  %s1063_s13 = smov 0  }
   0x8   :  { %s1065_s14 = smov 0   ;;  %s1067_s15 = smov 0  }
   0x9 LB: > { %s1325_s2 = sld [smem:[#allocation14_spill]]  ;;  %s1085_s19 = sadd.s32 4294967295, %s1033_s15   ;;  %s1033_s15 = sphi %s1067_s15, %s1338_s15   ;;  %s1029_s14 = sphi %s1065_s14, %s1337_s14   ;;  %s1025_s13 = sphi %s1063_s13, %s1336_s13   ;;  %s1021_s12 = sphi %s1061_s12, %s1335_s12  }
   0xa   : > { %p752_p0 = scmp.ge.s32.totalorder %s1033_s15, 1  ;;  %p43_p1 = scmp.eq.s32.totalorder %s1085_s19, 0 }
   0xb   : > { %p126_p2 = scmp.lt.s32.totalorder %s1033_s15, 3  ;;  %s1035_s21 = smov [#allocation7]  }
   0xc   : > { %s139_s22 = sshll.u32 %s1035_s21, 4  ;;  %s1036_s23 = smov 128   ;;  %s140_s22 = int_to_ptr.vmem [resolvable:$true] %s139_s22 }
   0xd   : > { %p1090_p3 = pnand %p752_p0, %p126_p2  ;;  %s1037_s24 = smov 8  }
   0xe   : > { %s751_s25 = sadd.s32 4294967294, %s1033_s15   ;;  %s1101_s26 = sadd.s32 1, %s1033_s15  }
   0xf   : > { %s137_s18 = sshll.u32 %s1325_s2, 4  ;;  %p788_p4 = pneg %p1090_p3  ;;  %s138_s18 = int_to_ptr.hbm [resolvable:$true] %s137_s18 }
  0x10   : > { %s29_s27 = sadd.s32 1, %s1029_s14  ;;  %s26_s28 = ssub.s32 %s1033_s15, %s1101_s26 }
  0x11   : > { %p789_p6 = pnand %p788_p4, %p43_p1  ;;  %p36_p7 = scmp.ne.s32.totalorder %s1029_s14, %s1025_s13 }
  0x12   : > { %p27_p8 = scmp.eq.s32.totalorder %s26_s28, 0  ;;  %p37_p9 = scmp.eq.s32.totalorder %s1033_s15, 0 }
  0x13   : > { %791 = dma.hbm_to_vmem [thread:$0]  (!%p789_p6), %s138_s18, 3200, %s140_s22, [#allocation6], %s1036_s23, %s1036_s23, %s1037_s24  }
  0x14   : > { %p42_p10 = scmp.ne.s32.totalorder %s1025_s13, %s1021_s12  ;;  %p113_p11 = scmp.eq.s32.totalorder %s1085_s19, 1 }
  0x15   : > { %s1113_s29 = scalar_select %p27_p8, %s1029_s14, %s29_s27  }
  0x16   : > { %p1115_p12 = por %p37_p9, %p36_p7  ;;  %p1121_p13 = por %p43_p1, %p42_p10 }
  0x17   : > { %1327 = sst [smem:[#allocation13_spill]] %s1113_s29  ;;  %p1125_p0 = por %p113_p11, %p36_p7 }
  0x18   : > { %p119_p2 = scmp.eq.s32.totalorder %s751_s25, 1  ;;  %p804_p4 = scmp.lt.s32.totalorder %s1033_s15, 2 }
  0x19   : > { %s1131_s6 = sand.u32 1, %s1029_s14   ;;  %s756_s9 = sshll.u32 %s1033_s15, 3 }
  0x1a   : > { %p1133_p6 = por %p119_p2, %p42_p10  ;;  %s755_s8 = sshll.u32 %s1131_s6, 3 }
  0x1b   : > { %s161_s16 = scalar_lea.hbm %s1320_s0, %s756_s9  ;;  %s157_s18 = scalar_lea.vmem [#allocation2], %s755_s8 }
  0x1c   : > { %s163_s17 = sshll.u32 %s161_s16, 4  ;;  %s165_s21 = sshll.u32 %s157_s18, 4  ;;  %s164_s17 = int_to_ptr.hbm [resolvable:$true] %s163_s17  ;;  %s166_s21 = int_to_ptr.vmem [resolvable:$true] %s165_s21 }
  0x1d   : > { %p1144_p7 = pnand %p804_p4, %p1115_p12  ;;  %s172_s23 = sand.u32 1, %s1033_s15  }
  0x1e   : > { %s178_s27 = scalar_lea.hbm %s1321_s1, %s1033_s15  ;;  %s154_s28 = scalar_lea.sflag [#allocation3], %s1131_s6 }
  0x1f   : > { %s899_s10 = sshra.s32 %s164_s17, 4  ;;  %p903_p9 = pneg %p1144_p7  ;;  %s900_s10 = int_to_ptr.hbm [resolvable:$true] %s899_s10 }
  0x20   : > { %s901_s9 = scalar_lea.hbm %s900_s10, 8  ;;  %s906_s11 = scalar_lea.hbm %s1320_s0, 16 }
  0x21   : > { %p902_p8 = scmp.ne.s32.totalorder %s900_s10, %s901_s9  ;;  %p907_p12 = scmp.lt.s32.totalorder %s900_s10, %s1320_s0 }
  0x22   : > { %p908_p2 = scmp.lt.s32.totalorder %s906_s11, %s901_s9 }
  0x23   : > { %p904_p10 = pnand %p903_p9, %p902_p8 }
  0x24   : > { %p909_p4 = por %p908_p2, %p907_p12 }
  0x25   : > { %p905_p11 = pneg %p904_p10 }
  0x27   : > { %p910_p5 = pnand %p909_p4, %p905_p11 }
  0x29   : > { %913 = shalt.err (!%p910_p5)
}
  0x2a   : > { %795 = dma.hbm_to_vmem [thread:$0]  (!%p1144_p7), %s164_s17, 128, %s166_s21, %s154_s28  }
  0x2b   : > { %s180_s24 = sshll.u32 %s178_s27, 4  ;;  %s175_s25 = scalar_lea.vmem [#allocation5], %s1131_s6  ;;  %s181_s24 = int_to_ptr.hbm [resolvable:$true] %s180_s24 }
  0x2c   : > { %s182_s2 = sshll.u32 %s175_s25, 4  ;;  %s173_s30 = scalar_lea.sflag [#allocation6], %s172_s23  ;;  %s183_s2 = int_to_ptr.vmem [resolvable:$true] %s182_s2 }
  0x2d   : > { %s929_s8 = sshra.s32 %s181_s24, 4  ;;  %s936_s11 = scalar_lea.hbm %s1321_s1, 2  ;;  %s930_s8 = int_to_ptr.hbm [resolvable:$true] %s929_s8 }
  0x2e   : > { %s931_s29 = scalar_lea.hbm %s930_s8, 1  ;;  %p937_p5 = scmp.lt.s32.totalorder %s930_s8, %s1321_s1 }
  0x2f   : > { %p932_p8 = scmp.ne.s32.totalorder %s930_s8, %s931_s29  ;;  %p938_p12 = scmp.lt.s32.totalorder %s936_s11, %s931_s29 }
  0x31   : > { %p934_p10 = pnand %p932_p8, %p903_p9  ;;  %p939_p2 = por %p938_p12, %p937_p5 }
  0x33   : > { %p935_p11 = pneg %p934_p10 }
  0x35   : > { %p940_p4 = pnand %p939_p2, %p935_p11 }
  0x37   : > { %943 = shalt.err (!%p940_p4)
}
  0x38   : > { %798 = dma.hbm_to_vmem [thread:$0]  (!%p1144_p7), %s181_s24, 16, %s183_s2, %s173_s30  }
  0x39   : > { %191 = sbr.rel (%p1090_p3) target bundleno = 1835 (0x72b), region = 32  ;;  %s1182_s6 = sand.u32 (!%p1090_p3), 1, %s1025_s13  }
  0x3a   : > { %s758_s21 = sshll.u32 (!%p1090_p3), %s1182_s6, 3  ;;  %s194_s23 = scalar_lea.sflag (!%p1090_p3), [#allocation3], %s1182_s6 }
  0x3b   : > { %s197_s29 = scalar_lea.vmem (!%p1090_p3), [#allocation2], %s758_s21 }
  0x3e   : > { %1004 = dma.done.wait (%p1121_p13), %s194_s23, 128  }
  0x3f   : > { %1006 = vsyncadd (%p1121_p13), %s194_s23, 4294967168  ;;  %s203_s2 = sand.u32 1, %s1085_s19   ;;  %s206_s22 = scalar_lea.vmem [#allocation5], %s1182_s6 }
  0x40   : > { %s204_s20 = scalar_lea.sflag [#allocation6], %s203_s2 }
  0x41   : > { %1008 = dma.done.wait (%p1121_p13), %s204_s20, 16  }
  0x42   : > { %1010 = vsyncadd (%p1121_p13), %s204_s20, 4294967280 }
  0x43   : > { %1012 = dma.done.wait (%p43_p1), [#allocation6], 3200  }
  0x44   : > { %1014 = vsyncadd (%p43_p1), [#allocation6], 4294964096  ;;  %vm268_vm0 = vcmask 261120   ;;  %v1202_v0 = vld [vmem:[%s197_s29] sm:$0xff]  ;;  %v242_v10 = vld [vmem:[#allocation7] sm:$0xff]  ;;  %s1038_s4 = smov 96  }
  0x45   : > { %v269_v1 = vsel %vm268_vm0, %v1202_v0, 0.0  ;;  %v245_v7 = vld [vmem:[#allocation7 + $0x18] sm:$0xff]  ;;  %v244_v8 = vld [vmem:[#allocation7 + $0x10] sm:$0xff]  ;;  %v243_v9 = vld [vmem:[#allocation7 + $0x8] sm:$0xff]  ;;  %v1039_v44 = vmov -1e+09  }
  0x46   : > { %270 = vadd.xlane.f32.xlu0 %v269_v1  ;;  %314 = vmatpush.msra.mxu0 %v245_v7  ;;  %v1208_v23 = vld [vmem:[#allocation7 + $0xa0] sm:$0xff]  ;;  %v1217_v34 = vld [vmem:[#allocation7 + $0xa8] sm:$0xff]  ;;  %v1223_v37 = vld [vmem:[#allocation7 + $0xb0] sm:$0xff]  ;;  %vm383_vm4 = vcmask 64512   ;;  %s1040_s27 = smov 64   ;;  %s775_s28 = sshll.u32 %s1085_s19, 3 }
  0x47   : > { %v293_v25 = vperm.slane %v1208_v23, 2  ;;  %v296_v27 = vperm.slane %v1208_v23, 3  ;;  %v298_v31 = vperm.slane %v1208_v23, 0  ;;  %v1228_v39 = vld [vmem:[#allocation7 + $0xb8] sm:$0xff]  ;;  %v1233_v41 = vld [vmem:[#allocation7 + $0xc0] sm:$0xff]  ;;  %s648_s25 = scalar_lea.hbm %s1323_s3, %s775_s28  ;;  %s238_s30 = scalar_lea.vmem [#allocation8], %s758_s21 }
  0x48   : > { %315 = vmatpush.msra.mxu0 %v244_v8  ;;  %v240_v43 = vld [vmem:[%s206_s22] sm:$0x1]  ;;  %s650_s8 = sshll.u32 %s238_s30, 4  ;;  %s652_s10 = sshll.u32 %s648_s25, 4  ;;  %s651_s8 = int_to_ptr.vmem [resolvable:$true] %s650_s8  ;;  %s653_s10 = int_to_ptr.hbm [resolvable:$true] %s652_s10 }
  0x49   : > { %vm241_vm3 = vcmp.gt.f32.partialorder %v240_v43, 0.0  ;;  %s638_s19 = scalar_lea.sflag [#allocation4], %s1182_s6  ;;  %s973_s9 = sshra.s32 %s653_s10, 4  ;;  %s974_s9 = int_to_ptr.hbm [resolvable:$true] %s973_s9 }
  0x4a   : > { %316 = vmatpush.msra.mxu0 %v243_v9  ;;  %v267_v45 = vsel %vm241_vm3, 0.0, %v1039_v44  ;;  %s975_s11 = scalar_lea.hbm %s974_s9, 8  ;;  %s979_s21 = scalar_lea.hbm %s1323_s3, 16 }
  0x4b   : > { %v377_v46 = vperm.slane %v267_v45, 0  ;;  %p976_p1 = scmp.ne.s32.totalorder %s974_s9, %s975_s11  ;;  %p980_p7 = scmp.lt.s32.totalorder %s974_s9, %s1323_s3 }
  0x4c   : > { %317 = vmatpush.msra.mxu0 %v242_v10  ;;  %p981_p9 = scmp.lt.s32.totalorder %s979_s21, %s975_s11 }
  0x4d   : > { %p977_p3 = pnand %p976_p1, %p1125_p0 }
  0x4e   : > { %p982_p8 = por %p981_p9, %p980_p7 }
  0x4f   : > { %p978_p13 = pneg %p977_p3 }
  0x51   : > { %p983_p10 = pnand %p982_p8, %p978_p13 }
  0xb9   : > { %v271_v2 = vpop.xlane.xlu0 %270 }
  0xba   : > { %v272_v3 = vmul.f32 0.03125, %v271_v2 }
  0xbc   : > { %v273_v4 = vsub.f32 %v1202_v0, %v272_v3 }
  0xbe   : > { %v274_v5 = vmul.f32 %v273_v4, %v273_v4  ;;  %v294_v26 = vmul.f32 %v293_v25, %v273_v4 }
  0xc0   : > { %v275_v6 = vsel %vm268_vm0, %v274_v5, 0.0 }
  0xc1   : > { %276 = vadd.xlane.f32.xlu0 %v275_v6 }
 0x134   : > { %v277_v11 = vpop.xlane.xlu0 %276 }
 0x135   : > { %v278_v12 = vmul.f32 0.032258064, %v277_v11 }
 0x137   : > { %845 = vrsqrt.f32 %v278_v12  ;;  %vm286_vm1 = vcmp.eq.f32.partialorder %v278_v12, inf  ;;  %v289_v20 = vand.u32 2147483648, %v278_v12  ;;  %vm288_vm2 = vcmp.eq.f32.partialorder %v278_v12, 0.0 }
 0x13d   : > { %v846_v13 = vpop.eup %845 }
 0x13e   : > { %v280_v14 = vmul.f32 %v846_v13, %v278_v12 }
 0x140   : > { %v281_v15 = vmul.f32 %v846_v13, %v280_v14 }
 0x142   : > { %v282_v16 = vmul.f32 0.5, %v281_v15 }
 0x144   : > { %v283_v17 = vsub.f32 1.5, %v282_v16 }
 0x146   : > { %v284_v18 = vmul.f32 %v846_v13, %v283_v17 }
 0x148   : > { %v285_v19 = vmul.f32 %v284_v18, %v278_v12 }
 0x14a   : > { %v287_v21 = vsel %vm286_vm1, %v278_v12, %v285_v19 }
 0x14b   : > { %v290_v22 = vsel %vm288_vm2, %v289_v20, %v287_v21 }
 0x14c   : > { %v291_v24 = vadd.f32 1e-06, %v290_v22 }
 0x14e   : > { %847 = vrcp.f32 %v291_v24 }
 0x154   : > { %v848_v28 = vpop.eup %847 }
 0x155   : > { %v295_v29 = vmul.f32 %v848_v28, %v294_v26 }
 0x157   : > { %v297_v30 = vadd.f32 %v296_v27, %v295_v29 }
 0x159   : > { %761 = vmatmul.msk.f32.vlgmr.msra.gmra.mxu0 %vm268_vm0, %v297_v30 }
 0x1d6   : > { %v319_v32 = vpop.f32.mrf.mxu0 }
 0x1d7   : > { %v1214_v33 = vadd.f32 %v319_v32, %v298_v31 }
 0x1d9   : > { %327 = vrot.lane.b32.xlu1 %v1214_v33, %s1038_s4  ;;  %v322_v36 = vmul.f32 %v1214_v33, %v1217_v34  ;;  %v323_v38 = vmul.f32 %v1214_v33, %v1223_v37  ;;  %v324_v40 = vmul.f32 %v1214_v33, %v1228_v39  ;;  %v325_v42 = vmul.f32 %v1214_v33, %v1233_v41 }
 0x24b   : > { %v328_v35 = vpop.permute.xlu1 %327 }
 0x24c   : > { %762 = vmatpush.xpose.msk.msra.mxu1 %vm268_vm0, %v328_v35 }
 0x24f   : > { %763 = vmatmul.msk.f32.vlgmr.msra.gmra.mxu1 %vm268_vm0, %v322_v36 }
 0x257   : > { %764 = vmatmul.msk.f32.gmra.mxu1 %vm268_vm0, %v323_v38 }
 0x25f   : > { %765 = vmatmul.msk.f32.gmra.mxu1 %vm268_vm0, %v324_v40 }
 0x267   : > { %766 = vmatmul.msk.f32.gmra.mxu1 %vm268_vm0, %v325_v42 }
 0x2cc   : > { %v360_v47 = vpop.f32.mrf.mxu1 }
 0x2cd   : > { %v372_v48 = vmul.f32 0.35355338, %v360_v47 }
 0x2cf   : > { %v379_v49 = vadd.f32 %v377_v46, %v372_v48 }
 0x2d1   : > { %v384_v50 = vsel %vm383_vm4, %v379_v49, -inf }
 0x2d2   : > { %385 = vmax.xlane.f32.xlu1 %v384_v50 }
 0x2d4   : > { %v363_v51 = vpop.f32.mrf.mxu1 }
 0x2d5   : > { %v373_v52 = vmul.f32 0.35355338, %v363_v51 }
 0x2d7   : > { %v380_v53 = vadd.f32 %v377_v46, %v373_v52 }
 0x2d9   : > { %v387_v54 = vsel %vm383_vm4, %v380_v53, -inf }
 0x2da   : > { %388 = vmax.xlane.f32.xlu2 %v387_v54 }
 0x2dc   : > { %v366_v55 = vpop.f32.mrf.mxu1 }
 0x2dd   : > { %v374_v56 = vmul.f32 0.35355338, %v366_v55 }
 0x2df   : > { %v381_v57 = vadd.f32 %v377_v46, %v374_v56 }
 0x2e1   : > { %v390_v58 = vsel %vm383_vm4, %v381_v57, -inf }
 0x2e2   : > { %391 = vmax.xlane.f32.xlu2 %v390_v58 }
 0x2e4   : > { %v369_v59 = vpop.f32.mrf.mxu1 }
 0x2e5   : > { %v375_v60 = vmul.f32 0.35355338, %v369_v59 }
 0x2e7   : > { %v382_v61 = vadd.f32 %v377_v46, %v375_v60 }
 0x2e9   : > { %v393_v62 = vsel %vm383_vm4, %v382_v61, -inf }
 0x2ea   : > { %394 = vmax.xlane.f32.xlu0 %v393_v62 }
 0x345   : > { %v386_v63 = vpop.xlane.xlu1 %385 }
 0x346   : > { %v396_v1 = vsub.f32 %v379_v49, %v386_v63 }
 0x348   : > { %v400_v2 = vmul.f32 1.442695, %v396_v1 }
 0x34a   : > { %849 = vpow2.f32 %v400_v2 }
 0x34d   : > { %v389_v3 = vpop.xlane.xlu2 %388 }
 0x34e   : > { %v397_v4 = vsub.f32 %v380_v53, %v389_v3 }
 0x350   : > { %v850_v5 = vpop.eup %849  ;;  %v402_v6 = vmul.f32 1.442695, %v397_v4 }
 0x351   : > { %v408_v7 = vsel %vm383_vm4, %v850_v5, 0.0 }
 0x352   : > { %851 = vpow2.f32 %v402_v6  ;;  %409 = vadd.xlane.f32.xlu2 %v408_v7 }
 0x355   : > { %v392_v8 = vpop.xlane.xlu2 %391 }
 0x356   : > { %v398_v9 = vsub.f32 %v381_v57, %v392_v8 }
 0x358   : > { %v1245_v10 = vpop.eup %851  ;;  %v404_v11 = vmul.f32 1.442695, %v398_v9 }
 0x359   : > { %v411_v12 = vsel %vm383_vm4, %v1245_v10, 0.0 }
 0x35a   : > { %853 = vpow2.f32 %v404_v11  ;;  %412 = vadd.xlane.f32.xlu0 %v411_v12  ;;  %v261_v11 = vld [vmem:[#allocation7 + $0x98] sm:$0xff]  ;;  %v260_v12 = vld [vmem:[#allocation7 + $0x90] sm:$0xff] }
 0x35b   : > { %547 = vmatpush.msra.mxu3 %v261_v11 }
 0x35d   : > { %v395_v13 = vpop.xlane.xlu0 %394  ;;  %548 = vmatpush.msra.mxu3 %v260_v12 }
 0x35e   : > { %v399_v14 = vsub.f32 %v382_v61, %v395_v13  ;;  %v259_v13 = vld [vmem:[#allocation7 + $0x88] sm:$0xff] }
 0x35f   : > { %549 = vmatpush.msra.mxu3 %v259_v13 }
 0x360   : > { %v1249_v15 = vpop.eup %853  ;;  %v406_v16 = vmul.f32 1.442695, %v399_v14  ;;  %v258_v14 = vld [vmem:[#allocation7 + $0x80] sm:$0xff] }
 0x361   : > { %v414_v17 = vsel %vm383_vm4, %v1249_v15, 0.0  ;;  %550 = vmatpush.msra.mxu3 %v258_v14 }
 0x362   : > { %855 = vpow2.f32 %v406_v16  ;;  %415 = vadd.xlane.f32.xlu2 %v414_v17 }
 0x368   : > { %v1253_v18 = vpop.eup %855 }
 0x369   : > { %v417_v19 = vsel %vm383_vm4, %v1253_v18, 0.0 }
 0x36a   : > { %418 = vadd.xlane.f32.xlu2 %v417_v19 }
 0x36e   : > { %480 = vrot.lane.b32.xlu0 %v1214_v33, %s1040_s27 }
 0x3c5   : > { %v410_v20 = vpop.xlane.xlu2 %409 }
 0x3c6   : > { %857 = vrcp.f32 %v410_v20  ;;  %v431_v31 = vand.u32 2147483648, %v410_v20  ;;  %vm425_vm6 = vweird.f32 %v410_v20  ;;  %v429_v35 = vand.u32 2147483647, %v410_v20 }
 0x3c8   : > { %v432_v38 = vor.u32 1.1754944e-38, %v431_v31  ;;  %vm430_vm8 = vcmp.eq.f32.partialorder %v429_v35, 8.507059e+37  ;;  %v249_v35 = vld [vmem:[#allocation7 + $0x38] sm:$0xff] }
 0x3c9   : > { %601 = vmatpush.msrb.mxu0 %v249_v35 }
 0x3cc   : > { %v858_v21 = vpop.eup %857 }
 0x3cd   : > { %v421_v22 = vmul.f32 %v858_v21, %v410_v20  ;;  %v413_v24 = vpop.xlane.xlu0 %412  ;;  %vm426_vm5 = vweird.f32 %v858_v21 }
 0x3ce   : > { %859 = vrcp.f32 %v413_v24  ;;  %vm427_vm7 = vmor %vm425_vm6, %vm426_vm5  ;;  %v446_v46 = vand.u32 2147483648, %v413_v24  ;;  %vm440_vm10 = vweird.f32 %v413_v24  ;;  %v444_v50 = vand.u32 2147483647, %v413_v24 }
 0x3cf   : > { %v422_v25 = vsub.f32 1.0, %v421_v22 }
 0x3d0   : > { %v447_v53 = vor.u32 1.1754944e-38, %v446_v46  ;;  %vm445_vm12 = vcmp.eq.f32.partialorder %v444_v50, 8.507059e+37  ;;  %v254_v46 = vld [vmem:[#allocation7 + $0x60] sm:$0xff] }
 0x3d1   : > { %v423_v26 = vmul.f32 %v858_v21, %v422_v25 }
 0x3d3   : > { %v424_v30 = vadd.f32 %v858_v21, %v423_v26 }
 0x3d4   : > { %v860_v27 = vpop.eup %859 }
 0x3d5   : > { %v436_v28 = vmul.f32 %v860_v27, %v413_v24  ;;  %v416_v29 = vpop.xlane.xlu2 %415  ;;  %v428_v36 = vsel %vm427_vm7, %v858_v21, %v424_v30  ;;  %vm441_vm9 = vweird.f32 %v860_v27 }
 0x3d6   : > { %861 = vrcp.f32 %v416_v29  ;;  %v433_v44 = vsel %vm430_vm8, %v432_v38, %v428_v36  ;;  %vm442_vm11 = vmor %vm440_vm10, %vm441_vm9  ;;  %v461_v58 = vand.u32 2147483648, %v416_v29  ;;  %vm455_vm14 = vweird.f32 %v416_v29  ;;  %v247_v36 = vld [vmem:[#allocation7 + $0x28] sm:$0xff]  ;;  %v246_v38 = vld [vmem:[#allocation7 + $0x20] sm:$0xff] }
 0x3d7   : > { %v437_v32 = vsub.f32 1.0, %v436_v28  ;;  %v434_v49 = vmul.f32 %v850_v5, %v433_v44  ;;  %v459_v61 = vand.u32 2147483647, %v416_v29  ;;  %v255_v44 = vld [vmem:[#allocation7 + $0x68] sm:$0xff]  ;;  %vm611_vm8 = vcmask 523264  }
 0x3d8   : > { %v462_v1 = vor.u32 1.1754944e-38, %v461_v58  ;;  %v580_v58 = vperm.slane %v1208_v23, 6 }
 0x3d9   : > { %v438_v33 = vmul.f32 %v860_v27, %v437_v32  ;;  %vm460_vm1 = vcmp.eq.f32.partialorder %v459_v61, 8.507059e+37 }
 0x3db   : > { %v439_v45 = vadd.f32 %v860_v27, %v438_v33  ;;  %v248_v33 = vld [vmem:[#allocation7 + $0x30] sm:$0xff] }
 0x3dc   : > { %v862_v40 = vpop.eup %861  ;;  %602 = vmatpush.msrb.mxu0 %v248_v33 }
 0x3dd   : > { %v451_v42 = vmul.f32 %v862_v40, %v416_v29  ;;  %v419_v43 = vpop.xlane.xlu2 %418  ;;  %v443_v52 = vsel %vm442_vm11, %v860_v27, %v439_v45  ;;  %vm456_vm13 = vweird.f32 %v862_v40  ;;  %v531_v27 = vperm.slane %v1208_v23, 1 }
 0x3de   : > { %863 = vrcp.f32 %v419_v43  ;;  %v448_v56 = vsel %vm445_vm12, %v447_v53, %v443_v52  ;;  %vm457_vm15 = vmor %vm455_vm14, %vm456_vm13  ;;  %v476_v4 = vand.u32 2147483648, %v419_v43  ;;  %vm470_vm3 = vweird.f32 %v419_v43  ;;  %603 = vmatpush.msrb.mxu0 %v247_v36 }
 0x3df   : > { %v452_v47 = vsub.f32 1.0, %v451_v42  ;;  %v449_v60 = vmul.f32 %v1245_v10, %v448_v56  ;;  %v474_v6 = vand.u32 2147483647, %v419_v43  ;;  %v257_v42 = vld [vmem:[#allocation7 + $0x78] sm:$0xff] }
 0x3e0   : > { %v481_v48 = vpop.permute.xlu0 %480  ;;  %v477_v8 = vor.u32 1.1754944e-38, %v476_v4  ;;  %604 = vmatpush.msrb.mxu0 %v246_v38  ;;  %623 = vmatpush.msrb.mxu3 %v257_v42  ;;  %v585_v4 = vperm.slane %v1208_v23, 4 }
 0x3e1   : > { %510 = vmatpush.msra.mxu2 %v481_v48  ;;  %v453_v51 = vmul.f32 %v862_v40, %v452_v47  ;;  %vm475_vm6 = vcmp.eq.f32.partialorder %v474_v6, 8.507059e+37  ;;  %v253_v48 = vld [vmem:[#allocation7 + $0x58] sm:$0xff] }
 0x3e2   : > { %767 = vmatmul.msk.f32.vlgmr.msra.gmra.mxu2 %vm383_vm4, %v434_v49 }
 0x3e3   : > { %v454_v57 = vadd.f32 %v862_v40, %v453_v51 }
 0x3e4   : > { %v864_v54 = vpop.eup %863 }
 0x3e5   : > { %v466_v55 = vmul.f32 %v864_v54, %v419_v43  ;;  %v458_v63 = vsel %vm457_vm15, %v862_v40, %v454_v57  ;;  %vm471_vm2 = vweird.f32 %v864_v54  ;;  %v256_v43 = vld [vmem:[#allocation7 + $0x70] sm:$0xff] }
 0x3e6   : > { %v463_v2 = vsel %vm460_vm1, %v462_v1, %v458_v63  ;;  %vm472_vm5 = vmor %vm470_vm3, %vm471_vm2  ;;  %624 = vmatpush.msrb.mxu3 %v256_v43  ;;  %v252_v1 = vld [vmem:[#allocation7 + $0x50] sm:$0xff] }
 0x3e7   : > { %v467_v59 = vsub.f32 1.0, %v466_v55  ;;  %v464_v5 = vmul.f32 %v1249_v15, %v463_v2  ;;  %v251_v2 = vld [vmem:[#allocation7 + $0x48] sm:$0xff] }
 0x3e8   : > { %625 = vmatpush.msrb.mxu3 %v255_v44 }
 0x3e9   : > { %v468_v62 = vmul.f32 %v864_v54, %v467_v59 }
 0x3ea   : > { %768 = vmatmul.msk.f32.gmra.mxu2 %vm383_vm4, %v449_v60  ;;  %626 = vmatpush.msrb.mxu3 %v254_v46  ;;  %v583_v60 = vperm.slane %v1208_v23, 7 }
 0x3eb   : > { %v469_v3 = vadd.f32 %v864_v54, %v468_v62 }
 0x3ec   : > { %627 = vmatpush.msrb.mxu3 %v253_v48 }
 0x3ed   : > { %v473_v7 = vsel %vm472_vm5, %v864_v54, %v469_v3  ;;  %v250_v3 = vld [vmem:[#allocation7 + $0x40] sm:$0xff] }
 0x3ee   : > { %v478_v9 = vsel %vm475_vm6, %v477_v8, %v473_v7  ;;  %628 = vmatpush.msrb.mxu3 %v252_v1  ;;  %v610_v8 = vperm.slane %v1208_v23, 5 }
 0x3ef   : > { %v479_v10 = vmul.f32 %v1253_v18, %v478_v9 }
 0x3f0   : > { %629 = vmatpush.msrb.mxu3 %v251_v2 }
 0x3f2   : > { %769 = vmatmul.msk.f32.gmra.mxu2 %vm383_vm4, %v464_v5  ;;  %630 = vmatpush.msrb.mxu3 %v250_v3 }
 0x3fa   : > { %770 = vmatmul.msk.f32.gmra.mxu2 %vm383_vm4, %v479_v10 }
 0x465   : > { %v512_v15 = vpop.f32.mrf.mxu2 }
 0x466   : > { %v524_v20 = vmul.f32 %v512_v15, %v1217_v34 }
 0x46d   : > { %v515_v16 = vpop.f32.mrf.mxu2 }
 0x46e   : > { %v525_v19 = vmul.f32 %v515_v16, %v1223_v37 }
 0x470   : > { %v528_v18 = vadd.f32 %v525_v19, %v524_v20 }
 0x475   : > { %v518_v17 = vpop.f32.mrf.mxu2 }
 0x476   : > { %v526_v21 = vmul.f32 %v518_v17, %v1228_v39 }
 0x478   : > { %v529_v24 = vadd.f32 %v528_v18, %v526_v21 }
 0x47d   : > { %v521_v22 = vpop.f32.mrf.mxu2 }
 0x47e   : > { %v527_v25 = vmul.f32 %v521_v22, %v1233_v41 }
 0x480   : > { %v530_v26 = vadd.f32 %v529_v24, %v527_v25 }
 0x482   : > { %771 = vmatmul.msk.f32.vlgmr.msra.gmra.mxu3 %vm268_vm0, %v530_v26 }
 0x505   : > { %v552_v28 = vpop.f32.mrf.mxu3 }
 0x506   : > { %v553_v29 = vadd.f32 %v552_v28, %v531_v27 }
 0x508   : > { %v1272_v30 = vadd.f32 %v553_v29, %v1202_v0 }
 0x50a   : > { %v556_v34 = vsel %vm268_vm0, %v1272_v30, 0.0 }
 0x50b   : > { %557 = vadd.xlane.f32.xlu2 %v556_v34 }
 0x57e   : > { %v558_v37 = vpop.xlane.xlu2 %557 }
 0x57f   : > { %v559_v39 = vmul.f32 0.03125, %v558_v37 }
 0x581   : > { %v560_v31 = vsub.f32 %v1272_v30, %v559_v39 }
 0x583   : > { %v561_v32 = vmul.f32 %v560_v31, %v560_v31  ;;  %v581_v59 = vmul.f32 %v580_v58, %v560_v31 }
 0x585   : > { %v562_v41 = vsel %vm268_vm0, %v561_v32, 0.0 }
 0x586   : > { %563 = vadd.xlane.f32.xlu2 %v562_v41 }
 0x5f9   : > { %v564_v0 = vpop.xlane.xlu2 %563 }
 0x5fa   : > { %v565_v40 = vmul.f32 0.032258064, %v564_v0 }
 0x5fc   : > { %865 = vrsqrt.f32 %v565_v40  ;;  %vm573_vm4 = vcmp.eq.f32.partialorder %v565_v40, inf  ;;  %v576_v54 = vand.u32 2147483648, %v565_v40  ;;  %vm575_vm7 = vcmp.eq.f32.partialorder %v565_v40, 0.0 }
 0x602   : > { %v866_v45 = vpop.eup %865 }
 0x603   : > { %v567_v47 = vmul.f32 %v866_v45, %v565_v40 }
 0x605   : > { %v568_v49 = vmul.f32 %v866_v45, %v567_v47 }
 0x607   : > { %v569_v50 = vmul.f32 0.5, %v568_v49 }
 0x609   : > { %v570_v51 = vsub.f32 1.5, %v569_v50 }
 0x60b   : > { %v571_v52 = vmul.f32 %v866_v45, %v570_v51 }
 0x60d   : > { %v572_v53 = vmul.f32 %v571_v52, %v565_v40 }
 0x60f   : > { %v574_v55 = vsel %vm573_vm4, %v565_v40, %v572_v53 }
 0x610   : > { %v577_v56 = vsel %vm575_vm7, %v576_v54, %v574_v55 }
 0x611   : > { %v578_v57 = vadd.f32 1e-06, %v577_v56 }
 0x613   : > { %867 = vrcp.f32 %v578_v57 }
 0x619   : > { %v868_v61 = vpop.eup %867 }
 0x61a   : > { %v582_v62 = vmul.f32 %v868_v61, %v581_v59 }
 0x61c   : > { %v584_v63 = vadd.f32 %v583_v60, %v582_v62 }
 0x61e   : > { %772 = vmatmul.msk.f32.vlgmr.msrb.gmra.mxu0 %vm268_vm0, %v584_v63 }
 0x69b   : > { %v606_v5 = vpop.f32.mrf.mxu0 }
 0x69c   : > { %v607_v6 = vadd.f32 %v606_v5, %v585_v4 }
 0x69e   : > { %v609_v7 = vmax.f32 %v607_v6, 0.0 }
 0x6a0   : > { %773 = vmatmul.msk.f32.vlgmr.msrb.gmra.mxu3 %vm611_vm8, %v609_v7 }
 0x723   : > { %v632_v9 = vpop.f32.mrf.mxu3 }
 0x724   : > { %v633_v10 = vadd.f32 %v632_v9, %v610_v8 }
 0x726   : > { %v635_v11 = vadd.f32 %v633_v10, %v1272_v30 }
 0x728   : > { %636 = vst.msk [vmem:[%s238_s30] sm:$0xff] %vm268_vm0, %v635_v11 }
 0x729   : > { %986 = shalt.err (!%p983_p10)
}
 0x72a   : > { %786 = dma.vmem_to_hbm [thread:$0]  (%p1125_p0), %s651_s8, 128, %s653_s10, %s638_s19  }
 0x72b PF: > { %s664_s6 = sand.u32 1, %s1021_s12   ;;  %p1333_p11 = scmp.ge.s32.totalorder %s1033_s15, 2 }
 0x72c   : > { %s665_s2 = scalar_lea.sflag [#allocation4], %s664_s6 }
 0x72d   : > { %p800_p5 = pnand %p1333_p11, %p1133_p6 }
 0x72f   : > { %p801_p12 = pneg %p800_p5 }
 0x731   : > { %1016 = dma.done.wait (%p801_p12), %s665_s2, 128  }
 0x732   : > { %1018 = vsyncadd (%p801_p12), %s665_s2, 4294967168  ;;  %s1334_s20 = sld [smem:[#allocation13_spill]]  ;;  %p19_p2 = scmp.ge.s32.totalorder %s1101_s26, 4  }
 0x733   : > { %s1335_s12 = smov %s1025_s13  ;;  %s1336_s13 = smov %s1029_s14 }
 0x734   : > { %s1338_s15 = smov %s1101_s26  ;;  %21 = sbr.rel (!%p19_p2) target bundleno = 9 (0x9), region = 94 }
 0x738   : > { %s1337_s14 = smov %s1334_s20 }
 0x739   :  { %671 = vsyncpa [#allocation3], 1 }
 0x73a   :  { %673 = vsyncpa [#allocation3 + $0x1], 1 }
 0x73b   :  { %674 = vsyncpa [#allocation6], 1 }
 0x73c   :  { %676 = vsyncpa [#allocation6 + $0x1], 1 }
 0x73d   :  { %677 = vsyncpa [#allocation4], 1 }
 0x73e   :  { %679 = vsyncpa [#allocation4 + $0x1], 1 }

</bundles_post_ra>
